<compile_context>
chip_gen: v6e
topology: v6e:2x2x1
jax: 0.10.0
libtpu: 0.0.40
codegen_flags: <defaults>
</compile_context>

<pallas_src>
import functools

import jax
import jax.numpy as jnp
from jax import lax
from jax.experimental import pallas as pl
from jax.experimental.pallas import tpu as pltpu


# ----------------------------- Pallas kernel ------------------------------ #
def align_gru_kernel(gi0_ref, whh0_ref, bhh0_ref, w1p_ref, b1p_ref,
                     h1_out_ref, h0_ref, h1_ref, *, H):
    """One grid step = one tile of t_tile timesteps of the 2-layer GRU recurrence."""
    t_tile, B = gi0_ref.shape[0], gi0_ref.shape[1]

    # Hidden state lives in VMEM scratch across grid steps; zero it on the first tile.
    @pl.when(pl.program_id(0) == 0)
    def _():
        h0_ref[...] = jnp.zeros_like(h0_ref)
        h1_ref[...] = jnp.zeros_like(h1_ref)

    # Hoist weight loads and bias broadcasts out of the (unrolled) time loop.
    whh0 = whh0_ref[...]                                          # (H, 3H)
    bhh0 = jnp.broadcast_to(bhh0_ref[...], (B, 3 * H))            # (B, 3H)
    w1p = w1p_ref[...]                                            # (2H, 4H)
    b1p = jnp.broadcast_to(b1p_ref[...], (B, 4 * H))              # (B, 4H)

    def step(t, carry):
        h0, h1 = carry                                            # (B, H) each, kept in vregs
        # ---- layer 0: input projection gi0 precomputed for all timesteps ----
        gi0 = gi0_ref[t]                                          # (B, 3H) = x@Wih0 + bih0
        gh0 = jnp.dot(h0, whh0, preferred_element_type=jnp.float32) + bhh0
        r0 = jax.nn.sigmoid(gi0[:, 0:H] + gh0[:, 0:H])
        z0 = jax.nn.sigmoid(gi0[:, H:2 * H] + gh0[:, H:2 * H])
        n0 = jnp.tanh(gi0[:, 2 * H:3 * H] + r0 * gh0[:, 2 * H:3 * H])
        h0n = (1.0 - z0) * n0 + z0 * h0

        # ---- layer 1: single fused dot; packed columns are [r | z | n_x | n_h] ----
        xh = jnp.concatenate([h0n, h1], axis=-1)                  # (B, 2H)
        g1 = jnp.dot(xh, w1p, preferred_element_type=jnp.float32) + b1p   # (B, 4H)
        r1 = jax.nn.sigmoid(g1[:, 0:H])
        z1 = jax.nn.sigmoid(g1[:, H:2 * H])
        n1 = jnp.tanh(g1[:, 2 * H:3 * H] + r1 * g1[:, 3 * H:4 * H])
        h1n = (1.0 - z1) * n1 + z1 * h1

        h1_out_ref[t] = h1n                                       # lane-width-H store
        return (h0n, h1n)

    h0f, h1f = lax.fori_loop(0, t_tile, step, (h0_ref[...], h1_ref[...]),
                             unroll=min(t_tile, 8))
    h0_ref[...] = h0f
    h1_ref[...] = h1f


# ------------------------------- Wrapper ----------------------------------- #
def pack_layer1_weights(params, H):
    """Repack layer-1 GRU weights into one (2H, 4H) matrix / (1, 4H) bias: [r | z | n_x | n_h]."""
    wih1, whh1 = params["wih1"], params["whh1"]
    bih1, bhh1 = params["bih1"], params["bhh1"]
    zeros = jnp.zeros((H, H), jnp.float32)
    w1p = jnp.concatenate([
        jnp.concatenate([wih1[:, 0:H],      whh1[:, 0:H]],      axis=0),   # r
        jnp.concatenate([wih1[:, H:2 * H],  whh1[:, H:2 * H]],  axis=0),   # z
        jnp.concatenate([wih1[:, 2 * H:],   zeros],             axis=0),   # n_x
        jnp.concatenate([zeros,             whh1[:, 2 * H:]],   axis=0),   # n_h
    ], axis=1)                                                             # (2H, 4H)
    b1p = jnp.concatenate([
        bih1[:, 0:H] + bhh1[:, 0:H],
        bih1[:, H:2 * H] + bhh1[:, H:2 * H],
        bih1[:, 2 * H:],                                                   # i_n bias (stays separate)
        bhh1[:, 2 * H:],                                                   # h_n bias (stays separate)
    ], axis=1)                                                             # (1, 4H)
    return w1p, b1p


def align_predictor_forward(tokens, params, *, t_tile=64):
    """tokens: (B, T, F) int32 token indices. Returns (B, T, 1) f32 in (0,1)."""
    # TODO(synk): only the dense-tensor branch of forward() is implemented (no PackedSequence);
    #             dropout is identity (inference mode / module.eval()).
    # SumEmbeddingSingleVocab: sum of single-vocab embeddings over the feature axis.
    emb = jnp.take(params["emb"], tokens, axis=0).sum(axis=2)              # (B, T, H)
    emb_tbh = jnp.transpose(emb, (1, 0, 2)).astype(jnp.float32)            # (T, B, H)
    T, B, H = emb_tbh.shape

    # Layer-0 input projection hoisted out of the recurrence: one big matmul over all T.
    gi0 = (emb_tbh.reshape(T * B, H) @ params["wih0"]
           + params["bih0"]).reshape(T, B, 3 * H)                          # (T, B, 3H)

    w1p, b1p = pack_layer1_weights(params, H)

    # Pad batch to a sublane multiple (8) and T up to a multiple of the time tile.
    B_pad = -(-B // 8) * 8
    t_tile = min(t_tile, max(T, 1))
    T_pad = -(-T // t_tile) * t_tile
    gi0 = jnp.pad(gi0, ((0, T_pad - T), (0, B_pad - B), (0, 0)))

    kernel = functools.partial(align_gru_kernel, H=H)
    hidden = pl.pallas_call(
        kernel,
        grid=(T_pad // t_tile,),
        in_specs=[
            pl.BlockSpec((t_tile, B_pad, 3 * H), lambda i: (i, 0, 0)),     # gi0 tiles (pipelined)
            pl.BlockSpec((H, 3 * H), lambda i: (0, 0)),                    # whh0 (resident)
            pl.BlockSpec((1, 3 * H), lambda i: (0, 0)),                    # bhh0
            pl.BlockSpec((2 * H, 4 * H), lambda i: (0, 0)),                # packed layer-1 W
            pl.BlockSpec((1, 4 * H), lambda i: (0, 0)),                    # packed layer-1 b
        ],
        out_specs=pl.BlockSpec((t_tile, B_pad, H), lambda i: (i, 0, 0)),
        out_shape=jax.ShapeDtypeStruct((T_pad, B_pad, H), jnp.float32),
        scratch_shapes=[pltpu.VMEM((B_pad, H), jnp.float32),               # layer-0 hidden state
                        pltpu.VMEM((B_pad, H), jnp.float32)],              # layer-1 hidden state
        compiler_params=pltpu.CompilerParams(
            dimension_semantics=("arbitrary",)),                           # sequential over T
    )(gi0, params["whh0"], params["bhh0"], w1p, b1p)

    hidden = hidden[:T, :B, :]                                             # (T, B, H)
    # FC(1) + sigmoid batched over all timesteps (avoids per-step width-1 masked stores).
    probs = jax.nn.sigmoid(hidden @ params["fcw"] + params["fcb"])         # (T, B, 1)
    return jnp.transpose(probs, (1, 0, 2))                                 # (B, T, 1)


# --------------------------- Pure-JAX reference ----------------------------- #
def _gru_cell_ref(x, h, wih, whh, bih, bhh, H):
    gi = x @ wih + bih
    gh = h @ whh + bhh
    r = jax.nn.sigmoid(gi[:, 0:H] + gh[:, 0:H])
    z = jax.nn.sigmoid(gi[:, H:2 * H] + gh[:, H:2 * H])
    n = jnp.tanh(gi[:, 2 * H:] + r * gh[:, 2 * H:])
    return (1.0 - z) * n + z * h


def reference_forward(tokens, params):
    emb = jnp.take(params["emb"], tokens, axis=0).sum(axis=2).astype(jnp.float32)
    B, T, H = emb.shape

    def layer(xs, wih, whh, bih, bhh):
        def f(h, x):
            hn = _gru_cell_ref(x, h, wih, whh, bih, bhh, H)
            return hn, hn
        _, ys = lax.scan(f, jnp.zeros((B, H), jnp.float32),
                         jnp.transpose(xs, (1, 0, 2)))
        return jnp.transpose(ys, (1, 0, 2))

    h = layer(emb, params["wih0"], params["whh0"], params["bih0"], params["bhh0"])
    h = layer(h, params["wih1"], params["whh1"], params["bih1"], params["bhh1"])
    return jax.nn.sigmoid(h @ params["fcw"] + params["fcb"])


# ------------------------------- Params ------------------------------------ #
def init_params(key, vocab_size, hidden_size):
    H = hidden_size
    bound = 1.0 / jnp.sqrt(H)
    ks = jax.random.split(key, 12)

    def u(k, shape):
        return jax.random.uniform(k, shape, jnp.float32, -bound, bound)

    return {
        "emb": jax.random.normal(ks[0], (vocab_size, H), jnp.float32) * 0.1,
        # GRU weights stored pre-transposed: (input_dim, 3H) / (H, 3H); gate order r,z,n.
        "wih0": u(ks[1], (H, 3 * H)), "whh0": u(ks[2], (H, 3 * H)),
        "bih0": u(ks[3], (1, 3 * H)), "bhh0": u(ks[4], (1, 3 * H)),
        "wih1": u(ks[5], (H, 3 * H)), "whh1": u(ks[6], (H, 3 * H)),
        "bih1": u(ks[7], (1, 3 * H)), "bhh1": u(ks[8], (1, 3 * H)),
        "fcw": u(ks[9], (H, 1)), "fcb": u(ks[10], (1, 1)),
    }


if __name__ == "__main__":
    VOCAB, HIDDEN = 40, 32
    B, T, F = 2, 8, 3   # batch, seq len, features summed by the embedding

    key = jax.random.PRNGKey(0)
    k_tok, k_par = jax.random.split(key)
    tokens = jax.random.randint(k_tok, (B, T, F), 0, VOCAB, dtype=jnp.int32)
    params = init_params(k_par, VOCAB, HIDDEN)

    # t_tile=4 -> grid of 2 tiles over T, exercising the cross-tile hidden-state carry.
    out = jax.block_until_ready(align_predictor_forward(tokens, params, t_tile=4))
    ref = jax.block_until_ready(reference_forward(tokens, params))

    assert out.shape == (B, T, 1), out.shape
    assert jnp.allclose(out, ref, rtol=1e-5, atol=1e-5), float(jnp.abs(out - ref).max())
    print("KERNEL_OK")
</pallas_src>

<mosaic_0001>
module attributes {stable_mosaic.version = 11 : i64} {
  func.func @align_gru_kernel(%arg0: i32, %arg1: memref<4x8x96xf32, #tpu.memory_space<vmem>>, %arg2: memref<32x96xf32, #tpu.memory_space<vmem>>, %arg3: memref<1x96xf32, #tpu.memory_space<vmem>>, %arg4: memref<64x128xf32, #tpu.memory_space<vmem>>, %arg5: memref<1x128xf32, #tpu.memory_space<vmem>>, %arg6: memref<4x8x32xf32, #tpu.memory_space<vmem>>, %arg7: memref<8x32xf32, #tpu.memory_space<vmem>>, %arg8: memref<8x32xf32, #tpu.memory_space<vmem>>) attributes {dimension_semantics = [#tpu.dimension_semantics<arbitrary>], iteration_bounds = array<i64: 2>, scalar_prefetch = 0 : i64, scratch_operands = 2 : i64, tpu.core_type = #tpu.core_type<tc>, window_params = [{transform_indices = @transform_0, window_bounds = array<i64: 4, 8, 96>}, {pipeline_mode = #tpu.pipeline_mode<synchronous>, transform_indices = @transform_1, window_bounds = array<i64: 32, 96>}, {pipeline_mode = #tpu.pipeline_mode<synchronous>, transform_indices = @transform_2, window_bounds = array<i64: 1, 96>}, {pipeline_mode = #tpu.pipeline_mode<synchronous>, transform_indices = @transform_3, window_bounds = array<i64: 64, 128>}, {pipeline_mode = #tpu.pipeline_mode<synchronous>, transform_indices = @transform_4, window_bounds = array<i64: 1, 128>}, {transform_indices = @transform_5, window_bounds = array<i64: 4, 8, 32>}]} {
    %c0_i32 = arith.constant 0 : i32
    %0 = arith.cmpi eq, %arg0, %c0_i32 : i32
    %1 = arith.extui %0 : i1 to i32
    %c0_i32_0 = arith.constant 0 : i32
    %2 = arith.cmpi ne, %1, %c0_i32_0 : i32
    scf.if %2 {
      %cst_64 = arith.constant 0.000000e+00 : f32
      %255 = vector.broadcast %cst_64 : f32 to vector<8x32xf32>
      %c0_65 = arith.constant 0 : index
      %c0_66 = arith.constant 0 : index
      %256 = vector.load %arg7[%c0_65, %c0_66] : memref<8x32xf32, #tpu.memory_space<vmem>>, vector<8x32xf32>
      tpu.vector_store %arg7[%c0_65, %c0_66], %255 {strides = array<i32>} : memref<8x32xf32, #tpu.memory_space<vmem>>, vector<8x32xf32>,
      %cst_67 = arith.constant 0.000000e+00 : f32
      %257 = vector.broadcast %cst_67 : f32 to vector<8x32xf32>
      %c0_68 = arith.constant 0 : index
      %c0_69 = arith.constant 0 : index
      %258 = vector.load %arg8[%c0_68, %c0_69] : memref<8x32xf32, #tpu.memory_space<vmem>>, vector<8x32xf32>
      tpu.vector_store %arg8[%c0_68, %c0_69], %257 {strides = array<i32>} : memref<8x32xf32, #tpu.memory_space<vmem>>, vector<8x32xf32>,
    } else {
    }
    %c0 = arith.constant 0 : index
    %c0_1 = arith.constant 0 : index
    %3 = vector.load %arg2[%c0, %c0_1] : memref<32x96xf32, #tpu.memory_space<vmem>>, vector<32x96xf32>
    %c0_2 = arith.constant 0 : index
    %c0_3 = arith.constant 0 : index
    %4 = vector.load %arg3[%c0_2, %c0_3] : memref<1x96xf32, #tpu.memory_space<vmem>>, vector<1x96xf32>
    %5 = vector.shape_cast %4 : vector<1x96xf32> to vector<1x96xf32>
    %6 = vector.broadcast %5 : vector<1x96xf32> to vector<8x96xf32>
    %c0_4 = arith.constant 0 : index
    %c0_5 = arith.constant 0 : index
    %7 = vector.load %arg4[%c0_4, %c0_5] : memref<64x128xf32, #tpu.memory_space<vmem>>, vector<64x128xf32>
    %c0_6 = arith.constant 0 : index
    %c0_7 = arith.constant 0 : index
    %8 = vector.load %arg5[%c0_6, %c0_7] : memref<1x128xf32, #tpu.memory_space<vmem>>, vector<1x128xf32>
    %9 = vector.shape_cast %8 : vector<1x128xf32> to vector<1x128xf32>
    %10 = vector.broadcast %9 : vector<1x128xf32> to vector<8x128xf32>
    %c0_8 = arith.constant 0 : index
    %c0_9 = arith.constant 0 : index
    %11 = vector.load %arg7[%c0_8, %c0_9] : memref<8x32xf32, #tpu.memory_space<vmem>>, vector<8x32xf32>
    %c0_10 = arith.constant 0 : index
    %c0_11 = arith.constant 0 : index
    %12 = vector.load %arg8[%c0_10, %c0_11] : memref<8x32xf32, #tpu.memory_space<vmem>>, vector<8x32xf32>
    %c0_i32_12 = arith.constant 0 : i32
    %13 = arith.index_cast %c0_i32_12 : i32 to index
    %c0_13 = arith.constant 0 : index
    %c0_14 = arith.constant 0 : index
    %14 = vector.load %arg1[%13, %c0_13, %c0_14] : memref<4x8x96xf32, #tpu.memory_space<vmem>>, vector<1x8x96xf32>
    %15 = vector.shape_cast %14 : vector<1x8x96xf32> to vector<8x96xf32>
    %cst = arith.constant dense<0.000000e+00> : vector<8x96xf32>
    %16 = tpu.matmul %11, %3, %cst {dimension_numbers = #tpu.dot_dimension_numbers<[1], [0], [0], [1], [0, 0, 1, 1], [], []>} : vector<8x32xf32>, vector<32x96xf32>, vector<8x96xf32> -> vector<8x96xf32>
    %17 = arith.addf %16, %6 : vector<8x96xf32>
    %18 = vector.extract_strided_slice %15 {offsets = [0, 0], sizes = [8, 32], strides = [1, 1]} : vector<8x96xf32> to vector<8x32xf32>
    %19 = vector.extract_strided_slice %17 {offsets = [0, 0], sizes = [8, 32], strides = [1, 1]} : vector<8x96xf32> to vector<8x32xf32>
    %20 = arith.addf %18, %19 : vector<8x32xf32>
    %21 = arith.negf %20 : vector<8x32xf32>
    %22 = math.exp %21 : vector<8x32xf32>
    %cst_15 = arith.constant 1.000000e+00 : f32
    %23 = vector.broadcast %cst_15 : f32 to vector<8x32xf32>
    %24 = arith.addf %23, %22 : vector<8x32xf32>
    %25 = arith.divf %23, %24 : vector<8x32xf32>
    %26 = vector.extract_strided_slice %15 {offsets = [0, 32], sizes = [8, 32], strides = [1, 1]} : vector<8x96xf32> to vector<8x32xf32>
    %27 = vector.extract_strided_slice %17 {offsets = [0, 32], sizes = [8, 32], strides = [1, 1]} : vector<8x96xf32> to vector<8x32xf32>
    %28 = arith.addf %26, %27 : vector<8x32xf32>
    %29 = arith.negf %28 : vector<8x32xf32>
    %30 = math.exp %29 : vector<8x32xf32>
    %cst_16 = arith.constant 1.000000e+00 : f32
    %31 = vector.broadcast %cst_16 : f32 to vector<8x32xf32>
    %32 = arith.addf %31, %30 : vector<8x32xf32>
    %33 = arith.divf %31, %32 : vector<8x32xf32>
    %34 = vector.extract_strided_slice %15 {offsets = [0, 64], sizes = [8, 32], strides = [1, 1]} : vector<8x96xf32> to vector<8x32xf32>
    %35 = vector.extract_strided_slice %17 {offsets = [0, 64], sizes = [8, 32], strides = [1, 1]} : vector<8x96xf32> to vector<8x32xf32>
    %36 = arith.mulf %25, %35 : vector<8x32xf32>
    %37 = arith.addf %34, %36 : vector<8x32xf32>
    %38 = math.tanh %37 : vector<8x32xf32>
    %cst_17 = arith.constant 1.000000e+00 : f32
    %39 = vector.broadcast %cst_17 : f32 to vector<8x32xf32>
    %40 = arith.subf %39, %33 : vector<8x32xf32>
    %41 = arith.mulf %40, %38 : vector<8x32xf32>
    %42 = arith.mulf %33, %11 : vector<8x32xf32>
    %43 = arith.addf %41, %42 : vector<8x32xf32>
    %44 = tpu.concatenate %43, %12 in 1 : vector<8x32xf32>, vector<8x32xf32> -> vector<8x64xf32>
    %cst_18 = arith.constant dense<0.000000e+00> : vector<8x128xf32>
    %45 = tpu.matmul %44, %7, %cst_18 {dimension_numbers = #tpu.dot_dimension_numbers<[1], [0], [0], [1], [0, 0, 1, 1], [], []>} : vector<8x64xf32>, vector<64x128xf32>, vector<8x128xf32> -> vector<8x128xf32>
    %46 = arith.addf %45, %10 : vector<8x128xf32>
    %47 = vector.extract_strided_slice %46 {offsets = [0, 0], sizes = [8, 32], strides = [1, 1]} : vector<8x128xf32> to vector<8x32xf32>
    %48 = arith.negf %47 : vector<8x32xf32>
    %49 = math.exp %48 : vector<8x32xf32>
    %cst_19 = arith.constant 1.000000e+00 : f32
    %50 = vector.broadcast %cst_19 : f32 to vector<8x32xf32>
    %51 = arith.addf %50, %49 : vector<8x32xf32>
    %52 = arith.divf %50, %51 : vector<8x32xf32>
    %53 = vector.extract_strided_slice %46 {offsets = [0, 32], sizes = [8, 32], strides = [1, 1]} : vector<8x128xf32> to vector<8x32xf32>
    %54 = arith.negf %53 : vector<8x32xf32>
    %55 = math.exp %54 : vector<8x32xf32>
    %cst_20 = arith.constant 1.000000e+00 : f32
    %56 = vector.broadcast %cst_20 : f32 to vector<8x32xf32>
    %57 = arith.addf %56, %55 : vector<8x32xf32>
    %58 = arith.divf %56, %57 : vector<8x32xf32>
    %59 = vector.extract_strided_slice %46 {offsets = [0, 64], sizes = [8, 32], strides = [1, 1]} : vector<8x128xf32> to vector<8x32xf32>
    %60 = vector.extract_strided_slice %46 {offsets = [0, 96], sizes = [8, 32], strides = [1, 1]} : vector<8x128xf32> to vector<8x32xf32>
    %61 = arith.mulf %52, %60 : vector<8x32xf32>
    %62 = arith.addf %59, %61 : vector<8x32xf32>
    %63 = math.tanh %62 : vector<8x32xf32>
    %cst_21 = arith.constant 1.000000e+00 : f32
    %64 = vector.broadcast %cst_21 : f32 to vector<8x32xf32>
    %65 = arith.subf %64, %58 : vector<8x32xf32>
    %66 = arith.mulf %65, %63 : vector<8x32xf32>
    %67 = arith.mulf %58, %12 : vector<8x32xf32>
    %68 = arith.addf %66, %67 : vector<8x32xf32>
    %69 = arith.index_cast %c0_i32_12 : i32 to index
    %c0_22 = arith.constant 0 : index
    %c0_23 = arith.constant 0 : index
    %70 = vector.load %arg6[%69, %c0_22, %c0_23] : memref<4x8x32xf32, #tpu.memory_space<vmem>>, vector<1x8x32xf32>
    %71 = vector.shape_cast %70 : vector<1x8x32xf32> to vector<8x32xf32>
    %72 = vector.shape_cast %68 : vector<8x32xf32> to vector<1x8x32xf32>
    tpu.vector_store %arg6[%69, %c0_22, %c0_23], %72 {strides = array<i32>} : memref<4x8x32xf32, #tpu.memory_space<vmem>>, vector<1x8x32xf32>,
    %c1_i32 = arith.constant 1 : i32
    %73 = arith.index_cast %c1_i32 : i32 to index
    %c0_24 = arith.constant 0 : index
    %c0_25 = arith.constant 0 : index
    %74 = vector.load %arg1[%73, %c0_24, %c0_25] : memref<4x8x96xf32, #tpu.memory_space<vmem>>, vector<1x8x96xf32>
    %75 = vector.shape_cast %74 : vector<1x8x96xf32> to vector<8x96xf32>
    %cst_26 = arith.constant dense<0.000000e+00> : vector<8x96xf32>
    %76 = tpu.matmul %43, %3, %cst_26 {dimension_numbers = #tpu.dot_dimension_numbers<[1], [0], [0], [1], [0, 0, 1, 1], [], []>} : vector<8x32xf32>, vector<32x96xf32>, vector<8x96xf32> -> vector<8x96xf32>
    %77 = arith.addf %76, %6 : vector<8x96xf32>
    %78 = vector.extract_strided_slice %75 {offsets = [0, 0], sizes = [8, 32], strides = [1, 1]} : vector<8x96xf32> to vector<8x32xf32>
    %79 = vector.extract_strided_slice %77 {offsets = [0, 0], sizes = [8, 32], strides = [1, 1]} : vector<8x96xf32> to vector<8x32xf32>
    %80 = arith.addf %78, %79 : vector<8x32xf32>
    %81 = arith.negf %80 : vector<8x32xf32>
    %82 = math.exp %81 : vector<8x32xf32>
    %cst_27 = arith.constant 1.000000e+00 : f32
    %83 = vector.broadcast %cst_27 : f32 to vector<8x32xf32>
    %84 = arith.addf %83, %82 : vector<8x32xf32>
    %85 = arith.divf %83, %84 : vector<8x32xf32>
    %86 = vector.extract_strided_slice %75 {offsets = [0, 32], sizes = [8, 32], strides = [1, 1]} : vector<8x96xf32> to vector<8x32xf32>
    %87 = vector.extract_strided_slice %77 {offsets = [0, 32], sizes = [8, 32], strides = [1, 1]} : vector<8x96xf32> to vector<8x32xf32>
    %88 = arith.addf %86, %87 : vector<8x32xf32>
    %89 = arith.negf %88 : vector<8x32xf32>
    %90 = math.exp %89 : vector<8x32xf32>
    %cst_28 = arith.constant 1.000000e+00 : f32
    %91 = vector.broadcast %cst_28 : f32 to vector<8x32xf32>
    %92 = arith.addf %91, %90 : vector<8x32xf32>
    %93 = arith.divf %91, %92 : vector<8x32xf32>
    %94 = vector.extract_strided_slice %75 {offsets = [0, 64], sizes = [8, 32], strides = [1, 1]} : vector<8x96xf32> to vector<8x32xf32>
    %95 = vector.extract_strided_slice %77 {offsets = [0, 64], sizes = [8, 32], strides = [1, 1]} : vector<8x96xf32> to vector<8x32xf32>
    %96 = arith.mulf %85, %95 : vector<8x32xf32>
    %97 = arith.addf %94, %96 : vector<8x32xf32>
    %98 = math.tanh %97 : vector<8x32xf32>
    %cst_29 = arith.constant 1.000000e+00 : f32
    %99 = vector.broadcast %cst_29 : f32 to vector<8x32xf32>
    %100 = arith.subf %99, %93 : vector<8x32xf32>
    %101 = arith.mulf %100, %98 : vector<8x32xf32>
    %102 = arith.mulf %93, %43 : vector<8x32xf32>
    %103 = arith.addf %101, %102 : vector<8x32xf32>
    %104 = tpu.concatenate %103, %68 in 1 : vector<8x32xf32>, vector<8x32xf32> -> vector<8x64xf32>
    %cst_30 = arith.constant dense<0.000000e+00> : vector<8x128xf32>
    %105 = tpu.matmul %104, %7, %cst_30 {dimension_numbers = #tpu.dot_dimension_numbers<[1], [0], [0], [1], [0, 0, 1, 1], [], []>} : vector<8x64xf32>, vector<64x128xf32>, vector<8x128xf32> -> vector<8x128xf32>
    %106 = arith.addf %105, %10 : vector<8x128xf32>
    %107 = vector.extract_strided_slice %106 {offsets = [0, 0], sizes = [8, 32], strides = [1, 1]} : vector<8x128xf32> to vector<8x32xf32>
    %108 = arith.negf %107 : vector<8x32xf32>
    %109 = math.exp %108 : vector<8x32xf32>
    %cst_31 = arith.constant 1.000000e+00 : f32
    %110 = vector.broadcast %cst_31 : f32 to vector<8x32xf32>
    %111 = arith.addf %110, %109 : vector<8x32xf32>
    %112 = arith.divf %110, %111 : vector<8x32xf32>
    %113 = vector.extract_strided_slice %106 {offsets = [0, 32], sizes = [8, 32], strides = [1, 1]} : vector<8x128xf32> to vector<8x32xf32>
    %114 = arith.negf %113 : vector<8x32xf32>
    %115 = math.exp %114 : vector<8x32xf32>
    %cst_32 = arith.constant 1.000000e+00 : f32
    %116 = vector.broadcast %cst_32 : f32 to vector<8x32xf32>
    %117 = arith.addf %116, %115 : vector<8x32xf32>
    %118 = arith.divf %116, %117 : vector<8x32xf32>
    %119 = vector.extract_strided_slice %106 {offsets = [0, 64], sizes = [8, 32], strides = [1, 1]} : vector<8x128xf32> to vector<8x32xf32>
    %120 = vector.extract_strided_slice %106 {offsets = [0, 96], sizes = [8, 32], strides = [1, 1]} : vector<8x128xf32> to vector<8x32xf32>
    %121 = arith.mulf %112, %120 : vector<8x32xf32>
    %122 = arith.addf %119, %121 : vector<8x32xf32>
    %123 = math.tanh %122 : vector<8x32xf32>
    %cst_33 = arith.constant 1.000000e+00 : f32
    %124 = vector.broadcast %cst_33 : f32 to vector<8x32xf32>
    %125 = arith.subf %124, %118 : vector<8x32xf32>
    %126 = arith.mulf %125, %123 : vector<8x32xf32>
    %127 = arith.mulf %118, %68 : vector<8x32xf32>
    %128 = arith.addf %126, %127 : vector<8x32xf32>
    %129 = arith.index_cast %c1_i32 : i32 to index
    %c0_34 = arith.constant 0 : index
    %c0_35 = arith.constant 0 : index
    %130 = vector.load %arg6[%129, %c0_34, %c0_35] : memref<4x8x32xf32, #tpu.memory_space<vmem>>, vector<1x8x32xf32>
    %131 = vector.shape_cast %130 : vector<1x8x32xf32> to vector<8x32xf32>
    %132 = vector.shape_cast %128 : vector<8x32xf32> to vector<1x8x32xf32>
    tpu.vector_store %arg6[%129, %c0_34, %c0_35], %132 {strides = array<i32>} : memref<4x8x32xf32, #tpu.memory_space<vmem>>, vector<1x8x32xf32>,
    %c2_i32 = arith.constant 2 : i32
    %133 = arith.index_cast %c2_i32 : i32 to index
    %c0_36 = arith.constant 0 : index
    %c0_37 = arith.constant 0 : index
    %134 = vector.load %arg1[%133, %c0_36, %c0_37] : memref<4x8x96xf32, #tpu.memory_space<vmem>>, vector<1x8x96xf32>
    %135 = vector.shape_cast %134 : vector<1x8x96xf32> to vector<8x96xf32>
    %cst_38 = arith.constant dense<0.000000e+00> : vector<8x96xf32>
    %136 = tpu.matmul %103, %3, %cst_38 {dimension_numbers = #tpu.dot_dimension_numbers<[1], [0], [0], [1], [0, 0, 1, 1], [], []>} : vector<8x32xf32>, vector<32x96xf32>, vector<8x96xf32> -> vector<8x96xf32>
    %137 = arith.addf %136, %6 : vector<8x96xf32>
    %138 = vector.extract_strided_slice %135 {offsets = [0, 0], sizes = [8, 32], strides = [1, 1]} : vector<8x96xf32> to vector<8x32xf32>
    %139 = vector.extract_strided_slice %137 {offsets = [0, 0], sizes = [8, 32], strides = [1, 1]} : vector<8x96xf32> to vector<8x32xf32>
    %140 = arith.addf %138, %139 : vector<8x32xf32>
    %141 = arith.negf %140 : vector<8x32xf32>
    %142 = math.exp %141 : vector<8x32xf32>
    %cst_39 = arith.constant 1.000000e+00 : f32
    %143 = vector.broadcast %cst_39 : f32 to vector<8x32xf32>
    %144 = arith.addf %143, %142 : vector<8x32xf32>
    %145 = arith.divf %143, %144 : vector<8x32xf32>
    %146 = vector.extract_strided_slice %135 {offsets = [0, 32], sizes = [8, 32], strides = [1, 1]} : vector<8x96xf32> to vector<8x32xf32>
    %147 = vector.extract_strided_slice %137 {offsets = [0, 32], sizes = [8, 32], strides = [1, 1]} : vector<8x96xf32> to vector<8x32xf32>
    %148 = arith.addf %146, %147 : vector<8x32xf32>
    %149 = arith.negf %148 : vector<8x32xf32>
    %150 = math.exp %149 : vector<8x32xf32>
    %cst_40 = arith.constant 1.000000e+00 : f32
    %151 = vector.broadcast %cst_40 : f32 to vector<8x32xf32>
    %152 = arith.addf %151, %150 : vector<8x32xf32>
    %153 = arith.divf %151, %152 : vector<8x32xf32>
    %154 = vector.extract_strided_slice %135 {offsets = [0, 64], sizes = [8, 32], strides = [1, 1]} : vector<8x96xf32> to vector<8x32xf32>
    %155 = vector.extract_strided_slice %137 {offsets = [0, 64], sizes = [8, 32], strides = [1, 1]} : vector<8x96xf32> to vector<8x32xf32>
    %156 = arith.mulf %145, %155 : vector<8x32xf32>
    %157 = arith.addf %154, %156 : vector<8x32xf32>
    %158 = math.tanh %157 : vector<8x32xf32>
    %cst_41 = arith.constant 1.000000e+00 : f32
    %159 = vector.broadcast %cst_41 : f32 to vector<8x32xf32>
    %160 = arith.subf %159, %153 : vector<8x32xf32>
    %161 = arith.mulf %160, %158 : vector<8x32xf32>
    %162 = arith.mulf %153, %103 : vector<8x32xf32>
    %163 = arith.addf %161, %162 : vector<8x32xf32>
    %164 = tpu.concatenate %163, %128 in 1 : vector<8x32xf32>, vector<8x32xf32> -> vector<8x64xf32>
    %cst_42 = arith.constant dense<0.000000e+00> : vector<8x128xf32>
    %165 = tpu.matmul %164, %7, %cst_42 {dimension_numbers = #tpu.dot_dimension_numbers<[1], [0], [0], [1], [0, 0, 1, 1], [], []>} : vector<8x64xf32>, vector<64x128xf32>, vector<8x128xf32> -> vector<8x128xf32>
    %166 = arith.addf %165, %10 : vector<8x128xf32>
    %167 = vector.extract_strided_slice %166 {offsets = [0, 0], sizes = [8, 32], strides = [1, 1]} : vector<8x128xf32> to vector<8x32xf32>
    %168 = arith.negf %167 : vector<8x32xf32>
    %169 = math.exp %168 : vector<8x32xf32>
    %cst_43 = arith.constant 1.000000e+00 : f32
    %170 = vector.broadcast %cst_43 : f32 to vector<8x32xf32>
    %171 = arith.addf %170, %169 : vector<8x32xf32>
    %172 = arith.divf %170, %171 : vector<8x32xf32>
    %173 = vector.extract_strided_slice %166 {offsets = [0, 32], sizes = [8, 32], strides = [1, 1]} : vector<8x128xf32> to vector<8x32xf32>
    %174 = arith.negf %173 : vector<8x32xf32>
    %175 = math.exp %174 : vector<8x32xf32>
    %cst_44 = arith.constant 1.000000e+00 : f32
    %176 = vector.broadcast %cst_44 : f32 to vector<8x32xf32>
    %177 = arith.addf %176, %175 : vector<8x32xf32>
    %178 = arith.divf %176, %177 : vector<8x32xf32>
    %179 = vector.extract_strided_slice %166 {offsets = [0, 64], sizes = [8, 32], strides = [1, 1]} : vector<8x128xf32> to vector<8x32xf32>
    %180 = vector.extract_strided_slice %166 {offsets = [0, 96], sizes = [8, 32], strides = [1, 1]} : vector<8x128xf32> to vector<8x32xf32>
    %181 = arith.mulf %172, %180 : vector<8x32xf32>
    %182 = arith.addf %179, %181 : vector<8x32xf32>
    %183 = math.tanh %182 : vector<8x32xf32>
    %cst_45 = arith.constant 1.000000e+00 : f32
    %184 = vector.broadcast %cst_45 : f32 to vector<8x32xf32>
    %185 = arith.subf %184, %178 : vector<8x32xf32>
    %186 = arith.mulf %185, %183 : vector<8x32xf32>
    %187 = arith.mulf %178, %128 : vector<8x32xf32>
    %188 = arith.addf %186, %187 : vector<8x32xf32>
    %189 = arith.index_cast %c2_i32 : i32 to index
    %c0_46 = arith.constant 0 : index
    %c0_47 = arith.constant 0 : index
    %190 = vector.load %arg6[%189, %c0_46, %c0_47] : memref<4x8x32xf32, #tpu.memory_space<vmem>>, vector<1x8x32xf32>
    %191 = vector.shape_cast %190 : vector<1x8x32xf32> to vector<8x32xf32>
    %192 = vector.shape_cast %188 : vector<8x32xf32> to vector<1x8x32xf32>
    tpu.vector_store %arg6[%189, %c0_46, %c0_47], %192 {strides = array<i32>} : memref<4x8x32xf32, #tpu.memory_space<vmem>>, vector<1x8x32xf32>,
    %c3_i32 = arith.constant 3 : i32
    %193 = arith.index_cast %c3_i32 : i32 to index
    %c0_48 = arith.constant 0 : index
    %c0_49 = arith.constant 0 : index
    %194 = vector.load %arg1[%193, %c0_48, %c0_49] : memref<4x8x96xf32, #tpu.memory_space<vmem>>, vector<1x8x96xf32>
    %195 = vector.shape_cast %194 : vector<1x8x96xf32> to vector<8x96xf32>
    %cst_50 = arith.constant dense<0.000000e+00> : vector<8x96xf32>
    %196 = tpu.matmul %163, %3, %cst_50 {dimension_numbers = #tpu.dot_dimension_numbers<[1], [0], [0], [1], [0, 0, 1, 1], [], []>} : vector<8x32xf32>, vector<32x96xf32>, vector<8x96xf32> -> vector<8x96xf32>
    %197 = arith.addf %196, %6 : vector<8x96xf32>
    %198 = vector.extract_strided_slice %195 {offsets = [0, 0], sizes = [8, 32], strides = [1, 1]} : vector<8x96xf32> to vector<8x32xf32>
    %199 = vector.extract_strided_slice %197 {offsets = [0, 0], sizes = [8, 32], strides = [1, 1]} : vector<8x96xf32> to vector<8x32xf32>
    %200 = arith.addf %198, %199 : vector<8x32xf32>
    %201 = arith.negf %200 : vector<8x32xf32>
    %202 = math.exp %201 : vector<8x32xf32>
    %cst_51 = arith.constant 1.000000e+00 : f32
    %203 = vector.broadcast %cst_51 : f32 to vector<8x32xf32>
    %204 = arith.addf %203, %202 : vector<8x32xf32>
    %205 = arith.divf %203, %204 : vector<8x32xf32>
    %206 = vector.extract_strided_slice %195 {offsets = [0, 32], sizes = [8, 32], strides = [1, 1]} : vector<8x96xf32> to vector<8x32xf32>
    %207 = vector.extract_strided_slice %197 {offsets = [0, 32], sizes = [8, 32], strides = [1, 1]} : vector<8x96xf32> to vector<8x32xf32>
    %208 = arith.addf %206, %207 : vector<8x32xf32>
    %209 = arith.negf %208 : vector<8x32xf32>
    %210 = math.exp %209 : vector<8x32xf32>
    %cst_52 = arith.constant 1.000000e+00 : f32
    %211 = vector.broadcast %cst_52 : f32 to vector<8x32xf32>
    %212 = arith.addf %211, %210 : vector<8x32xf32>
    %213 = arith.divf %211, %212 : vector<8x32xf32>
    %214 = vector.extract_strided_slice %195 {offsets = [0, 64], sizes = [8, 32], strides = [1, 1]} : vector<8x96xf32> to vector<8x32xf32>
    %215 = vector.extract_strided_slice %197 {offsets = [0, 64], sizes = [8, 32], strides = [1, 1]} : vector<8x96xf32> to vector<8x32xf32>
    %216 = arith.mulf %205, %215 : vector<8x32xf32>
    %217 = arith.addf %214, %216 : vector<8x32xf32>
    %218 = math.tanh %217 : vector<8x32xf32>
    %cst_53 = arith.constant 1.000000e+00 : f32
    %219 = vector.broadcast %cst_53 : f32 to vector<8x32xf32>
    %220 = arith.subf %219, %213 : vector<8x32xf32>
    %221 = arith.mulf %220, %218 : vector<8x32xf32>
    %222 = arith.mulf %213, %163 : vector<8x32xf32>
    %223 = arith.addf %221, %222 : vector<8x32xf32>
    %224 = tpu.concatenate %223, %188 in 1 : vector<8x32xf32>, vector<8x32xf32> -> vector<8x64xf32>
    %cst_54 = arith.constant dense<0.000000e+00> : vector<8x128xf32>
    %225 = tpu.matmul %224, %7, %cst_54 {dimension_numbers = #tpu.dot_dimension_numbers<[1], [0], [0], [1], [0, 0, 1, 1], [], []>} : vector<8x64xf32>, vector<64x128xf32>, vector<8x128xf32> -> vector<8x128xf32>
    %226 = arith.addf %225, %10 : vector<8x128xf32>
    %227 = vector.extract_strided_slice %226 {offsets = [0, 0], sizes = [8, 32], strides = [1, 1]} : vector<8x128xf32> to vector<8x32xf32>
    %228 = arith.negf %227 : vector<8x32xf32>
    %229 = math.exp %228 : vector<8x32xf32>
    %cst_55 = arith.constant 1.000000e+00 : f32
    %230 = vector.broadcast %cst_55 : f32 to vector<8x32xf32>
    %231 = arith.addf %230, %229 : vector<8x32xf32>
    %232 = arith.divf %230, %231 : vector<8x32xf32>
    %233 = vector.extract_strided_slice %226 {offsets = [0, 32], sizes = [8, 32], strides = [1, 1]} : vector<8x128xf32> to vector<8x32xf32>
    %234 = arith.negf %233 : vector<8x32xf32>
    %235 = math.exp %234 : vector<8x32xf32>
    %cst_56 = arith.constant 1.000000e+00 : f32
    %236 = vector.broadcast %cst_56 : f32 to vector<8x32xf32>
    %237 = arith.addf %236, %235 : vector<8x32xf32>
    %238 = arith.divf %236, %237 : vector<8x32xf32>
    %239 = vector.extract_strided_slice %226 {offsets = [0, 64], sizes = [8, 32], strides = [1, 1]} : vector<8x128xf32> to vector<8x32xf32>
    %240 = vector.extract_strided_slice %226 {offsets = [0, 96], sizes = [8, 32], strides = [1, 1]} : vector<8x128xf32> to vector<8x32xf32>
    %241 = arith.mulf %232, %240 : vector<8x32xf32>
    %242 = arith.addf %239, %241 : vector<8x32xf32>
    %243 = math.tanh %242 : vector<8x32xf32>
    %cst_57 = arith.constant 1.000000e+00 : f32
    %244 = vector.broadcast %cst_57 : f32 to vector<8x32xf32>
    %245 = arith.subf %244, %238 : vector<8x32xf32>
    %246 = arith.mulf %245, %243 : vector<8x32xf32>
    %247 = arith.mulf %238, %188 : vector<8x32xf32>
    %248 = arith.addf %246, %247 : vector<8x32xf32>
    %249 = arith.index_cast %c3_i32 : i32 to index
    %c0_58 = arith.constant 0 : index
    %c0_59 = arith.constant 0 : index
    %250 = vector.load %arg6[%249, %c0_58, %c0_59] : memref<4x8x32xf32, #tpu.memory_space<vmem>>, vector<1x8x32xf32>
    %251 = vector.shape_cast %250 : vector<1x8x32xf32> to vector<8x32xf32>
    %252 = vector.shape_cast %248 : vector<8x32xf32> to vector<1x8x32xf32>
    tpu.vector_store %arg6[%249, %c0_58, %c0_59], %252 {strides = array<i32>} : memref<4x8x32xf32, #tpu.memory_space<vmem>>, vector<1x8x32xf32>,
    %c4_i32 = arith.constant 4 : i32
    %c0_60 = arith.constant 0 : index
    %c0_61 = arith.constant 0 : index
    %253 = vector.load %arg7[%c0_60, %c0_61] : memref<8x32xf32, #tpu.memory_space<vmem>>, vector<8x32xf32>
    tpu.vector_store %arg7[%c0_60, %c0_61], %223 {strides = array<i32>} : memref<8x32xf32, #tpu.memory_space<vmem>>, vector<8x32xf32>,
    %c0_62 = arith.constant 0 : index
    %c0_63 = arith.constant 0 : index
    %254 = vector.load %arg8[%c0_62, %c0_63] : memref<8x32xf32, #tpu.memory_space<vmem>>, vector<8x32xf32>
    tpu.vector_store %arg8[%c0_62, %c0_63], %248 {strides = array<i32>} : memref<8x32xf32, #tpu.memory_space<vmem>>, vector<8x32xf32>,
    return
  }
  func.func @transform_0(%arg0: i32) -> (i32, i32, i32) {
    %c0_i32 = arith.constant 0 : i32
    %c0_i32_0 = arith.constant 0 : i32
    %c0_i32_1 = arith.constant 0 : i32
    return %arg0, %c0_i32, %c0_i32_0 : i32, i32, i32
  }
  func.func @transform_1(%arg0: i32) -> (i32, i32) {
    %c0_i32 = arith.constant 0 : i32
    %c0_i32_0 = arith.constant 0 : i32
    %c0_i32_1 = arith.constant 0 : i32
    return %c0_i32, %c0_i32_0 : i32, i32
  }
  func.func @transform_2(%arg0: i32) -> (i32, i32) {
    %c0_i32 = arith.constant 0 : i32
    %c0_i32_0 = arith.constant 0 : i32
    %c0_i32_1 = arith.constant 0 : i32
    return %c0_i32, %c0_i32_0 : i32, i32
  }
  func.func @transform_3(%arg0: i32) -> (i32, i32) {
    %c0_i32 = arith.constant 0 : i32
    %c0_i32_0 = arith.constant 0 : i32
    %c0_i32_1 = arith.constant 0 : i32
    return %c0_i32, %c0_i32_0 : i32, i32
  }
  func.func @transform_4(%arg0: i32) -> (i32, i32) {
    %c0_i32 = arith.constant 0 : i32
    %c0_i32_0 = arith.constant 0 : i32
    %c0_i32_1 = arith.constant 0 : i32
    return %c0_i32, %c0_i32_0 : i32, i32
  }
  func.func @transform_5(%arg0: i32) -> (i32, i32, i32) {
    %c0_i32 = arith.constant 0 : i32
    %c0_i32_0 = arith.constant 0 : i32
    %c0_i32_1 = arith.constant 0 : i32
    return %arg0, %c0_i32, %c0_i32_0 : i32, i32, i32
  }
}

</mosaic_0001>

<bundles_post_ra>
// kernel: tpu_custom_call.1
= control target key start
LH: loop header
LB: loop body
LE: loop exit
PB: predicated region body
PF: predicated region fallthrough
CT: control target
= control target key end

     0   :  { %10 = vsyncpa [#allocation5], 0  ;;  %s2246_s0 = inlined_call_operand.hbm [shape: f32[8,8,96], index: 0, kind: input, shape index: {}]   ;;  %s2247_s1 = inlined_call_operand.hbm [shape: f32[32,96], index: 1, kind: input, shape index: {}]   ;;  %s2248_s2 = inlined_call_operand.vmem [shape: f32[1,96], index: 2, kind: input, shape index: {}]   ;;  %s2249_s3 = inlined_call_operand.hbm [shape: f32[64,128], index: 3, kind: input, shape index: {}]   ;;  %s2250_s4 = inlined_call_operand.vmem [shape: f32[1,128], index: 4, kind: input, shape index: {}]   ;;  %s2251_s5 = inlined_call_operand.hbm [shape: f32[8,8,32], index: 5, kind: output, shape index: {}]  }
   0x1   :  { %12 = vsyncpa [#allocation5 + $0x1], 0 }
   0x2   :  { %13 = vsyncpa [#allocation8], 0 }
   0x3   :  { %14 = vsyncpa [#allocation6], 0 }
   0x4   :  { %16 = vsyncpa [#allocation6 + $0x1], 0  ;;  %s1801_s18 = smov 0   ;;  %s1803_s19 = smov 0  }
   0x5   :  { %s1805_s20 = smov 0   ;;  %s1807_s21 = smov 0  }
   0x6 LB: > { %s1822_s22 = sadd.s32 4294967295, %s1755_s21   ;;  %s1261_s23 = sadd.s32 4294967294, %s1755_s21   ;;  %s1755_s21 = sphi %s1807_s21, %s2275_s21   ;;  %s1751_s20 = sphi %s1805_s20, %s2274_s20   ;;  %s1747_s19 = sphi %s1803_s19, %s2273_s19   ;;  %s1743_s18 = sphi %s1801_s18, %s2272_s18  }
   0x7   : > { %p42_p0 = scmp.ne.s32.totalorder %s1747_s19, %s1743_s18  ;;  %p2252_p1 = scmp.eq.s32.totalorder %s1822_s22, 0 }
   0x8   : > { %p150_p2 = scmp.eq.s32.totalorder %s1822_s22, 1  ;;  %p156_p3 = scmp.eq.s32.totalorder %s1261_s23, 1 }
   0x9   : > { %p1831_p4 = por %p2252_p1, %p42_p0  ;;  %p1262_p5 = scmp.ge.s32.totalorder %s1755_s21, 1 }
   0xa   : > { %p1836_p6 = por %p156_p3, %p42_p0  ;;  %p163_p7 = scmp.lt.s32.totalorder %s1755_s21, 3 }
   0xb   : > { %s2257_s24 = scalar_select %p1831_p4, 1, 0 }
   0xc   : > { %s2258_s25 = scalar_select %p1836_p6, 1, 0 }
   0xd   : > { %p1842_p9 = pnand %p1262_p5, %p163_p7  ;;  %s1757_s27 = smov [#allocation7]  }
   0xe   : > { %s175_s28 = sshll.u32 %s1757_s27, 4  ;;  %s1758_s30 = smov [#allocation9]   ;;  %s176_s28 = int_to_ptr.vmem [resolvable:$true] %s175_s28 }
   0xf   : > { %s2259_s26 = scalar_select %p1842_p9, 1, 0 }
  0x10   : > { %p1494_p10 = pneg %p1842_p9  ;;  %s191_s6 = sshll.u32 %s1758_s30, 4  ;;  %s192_s6 = int_to_ptr.vmem [resolvable:$true] %s191_s6 }
  0x11   : > { %s1618_s7 = scalar_lea.vmem %s176_s28, 512  ;;  %p1626_p7 = scmp.lt.s32.totalorder %s176_s28, %s176_s28 }
  0x12   : > { %p1851_p12 = pnand %p1494_p10, %p2252_p1  ;;  %p1619_p0 = scmp.ne.s32.totalorder %s176_s28, %s1618_s7 }
  0x13   : > { %p1627_p11 = scmp.lt.s32.totalorder %s1618_s7, %s1618_s7 }
  0x14   : > { %p1609_p13 = pneg %p1851_p12 }
  0x15   : > { %p1628_p8 = por %p1627_p11, %p1626_p7 }
  0x16   : > { %p1621_p3 = pnand %p1619_p0, %p1609_p13 }
  0x18   : > { %p1622_p5 = pneg %p1621_p3 }
  0x1a   : > { %p1629_p10 = pnand %p1628_p8, %p1622_p5 }
  0x1c   : > { %1632 = shalt.err (!%p1629_p10)
}
  0x1d   : > { %s2253_s8 = smov 128   ;;  %s1760_s9 = smov 8  }
  0x1e   : > { %1497 = dma.hbm_to_vmem [thread:$0]  (!%p1851_p12), %s2247_s1, 512, %s176_s28, [#allocation8], %s2253_s8, %s2253_s8, %s1760_s9  }
  0x1f   : > { %s1644_s12 = scalar_lea.vmem %s192_s6, 1024  ;;  %p1652_p8 = scmp.lt.s32.totalorder %s192_s6, %s192_s6 }
  0x20   : > { %p1645_p0 = scmp.ne.s32.totalorder %s192_s6, %s1644_s12  ;;  %p1653_p5 = scmp.lt.s32.totalorder %s1644_s12, %s1644_s12 }
  0x22   : > { %p1647_p3 = pnand %p1645_p0, %p1609_p13  ;;  %p1654_p7 = por %p1653_p5, %p1652_p8 }
  0x24   : > { %p1648_p11 = pneg %p1647_p3 }
  0x26   : > { %p1655_p10 = pnand %p1654_p7, %p1648_p11 }
  0x28   : > { %1658 = shalt.err (!%p1655_p10)
}
  0x29   : > { %1500 = dma.hbm_to_vmem [thread:$0]  (!%p1851_p12), %s2249_s3, 1024, %s192_s6, [#allocation8], %s2253_s8, %s2253_s8, %s1760_s9  }
  0x2a   : > { %s1880_s15 = sadd.s32 1, %s1755_s21   ;;  %s29_s16 = sadd.s32 1, %s1751_s20 }
  0x2b   : > { %s26_s17 = ssub.s32 %s1755_s21, %s1880_s15  ;;  %p36_p13 = scmp.ne.s32.totalorder %s1751_s20, %s1747_s19 }
  0x2c   : > { %p27_p0 = scmp.eq.s32.totalorder %s26_s17, 0  ;;  %p37_p3 = scmp.eq.s32.totalorder %s1755_s21, 0 }
  0x2d   : > { %p1890_p11 = por %p150_p2, %p36_p13  ;;  %p1511_p8 = scmp.lt.s32.totalorder %s1755_s21, 2 }
  0x2e   : > { %s1896_s27 = scalar_select %p27_p0, %s1751_s20, %s29_s16  }
  0x2f   : > { %s2261_s23 = scalar_select %p1890_p11, 1, 0 }
  0x30   : > { %p38_p5 = por %p37_p3, %p36_p13  ;;  %s208_s28 = sand.u32 1, %s1751_s20  }
  0x31   : > { %s1266_s29 = sshll.u32 %s208_s28, 5  ;;  %s1304_s30 = sshll.u32 %s1755_s21, 9 }
  0x32   : > { %s1903_s10 = scalar_lea.hbm %s2246_s0, %s1304_s30  ;;  %s212_s11 = scalar_lea.vmem [#allocation4], %s1266_s29 }
  0x33   : > { %s219_s12 = sshll.u32 %s212_s11, 4  ;;  %p1907_p2 = pnand %p1511_p8, %p38_p5  ;;  %s1905_s12 = int_to_ptr.vmem [resolvable:$true] %s219_s12 }
  0x34   : > { %s1911_s14 = scalar_lea.sflag [#allocation5], %s208_s28  ;;  %s1659_s16 = scalar_lea.hbm %s1903_s10, 512 }
  0x35   : > { %p1660_p12 = scmp.ne.s32.totalorder %s1903_s10, %s1659_s16  ;;  %p1661_p7 = pneg %p1907_p2 }
  0x36   : > { %s1664_s29 = scalar_lea.hbm %s2246_s0, 1024  ;;  %p1665_p0 = scmp.lt.s32.totalorder %s1903_s10, %s2246_s0 }
  0x37   : > { %p1662_p10 = pnand %p1661_p7, %p1660_p12  ;;  %p1666_p3 = scmp.lt.s32.totalorder %s1664_s29, %s1659_s16 }
  0x39   : > { %p1663_p13 = pneg %p1662_p10  ;;  %p1667_p8 = por %p1666_p3, %p1665_p0 }
  0x3b   : > { %p1668_p5 = pnand %p1667_p8, %p1663_p13 }
  0x3d   : > { %1671 = shalt.err (!%p1668_p5)
}
  0x3e   : > { %s1672_s28 = scalar_lea.vmem %s1905_s12, 512  ;;  %s1761_s11 = smov [#allocation4]  }
  0x3f   : > { %p1673_p1 = scmp.ne.s32.totalorder %s1905_s12, %s1672_s28  ;;  %s1677_s8 = sshll.u32 %s1761_s11, 4  ;;  %s1678_s8 = int_to_ptr.vmem [resolvable:$false] %s1677_s8 }
  0x40   : > { %s1679_s17 = scalar_lea.vmem %s1678_s8, 1024  ;;  %p1680_p10 = scmp.lt.s32.totalorder %s1905_s12, %s1678_s8 }
  0x41   : > { %p1675_p6 = pnand %p1673_p1, %p1661_p7  ;;  %p1681_p11 = scmp.lt.s32.totalorder %s1679_s17, %s1672_s28 }
  0x43   : > { %p1676_p12 = pneg %p1675_p6  ;;  %p1682_p4 = por %p1681_p11, %p1680_p10 }
  0x45   : > { %p1683_p9 = pnand %p1682_p4, %p1676_p12 }
  0x47   : > { %1686 = shalt.err (!%p1683_p9)
}
  0x48   : > { %s2263_s16 = smov 128   ;;  %p2264_p1 = scmp.ne.s32.totalorder %s2259_s26, 0 }
  0x49   : > { %1504 = dma.hbm_to_vmem [thread:$0]  (!%p1907_p2), %s1903_s10, 512, %s1905_s12, %s1911_s14, %s2263_s16, %s2263_s16, %s1760_s9  }
  0x4a   : > { %231 = sbr.rel (%p2264_p1) target bundleno = 3505 (0xdb1), region = 40  ;;  %s1938_s30 = sand.u32 (!%p2264_p1), 1, %s1747_s19  }
  0x4b   : > { %s1270_s8 = sshll.u32 (!%p2264_p1), %s1938_s30, 5  ;;  %s234_s29 = scalar_lea.sflag (!%p2264_p1), [#allocation5], %s1938_s30 }
  0x4c   : > { %s1942_s6 = scalar_lea.vmem (!%p2264_p1), [#allocation4], %s1270_s8  ;;  %p2265_p4 = scmp.ne.s32.totalorder (!%p2264_p1), %s2257_s24, 0 }
  0x4f   : > { %1730 = dma.done.wait (%p2265_p4), %s234_s29, 512  }
  0x50   : > { %1732 = vsyncadd (%p2265_p4), %s234_s29, 4294966784  ;;  %p2266_p6 = scmp.eq.s32.totalorder %s1822_s22, 0 }
  0x52   : > { %1734 = dma.done.wait (%p2266_p6), [#allocation8], 1536   ;;  %p2267_p9 = pmov %p2266_p6 }
  0x53   : > { %s1952_s26 = scalar_lea.vmem [#allocation10], %s1270_s8  ;;  %p2268_p11 = scmp.ne.s32.totalorder %s1822_s22, 0 }
  0x54   : > { %1736 = vsyncadd (%p2267_p9), [#allocation8], 4294965760 }
  0x55   : > { %277 = sbr.rel (%p2268_p11) target bundleno = 92 (0x5c), region = 56 }
  0x5a   : > { %vm278_vm0 = vcmask 261120   ;;  %v1762_v0 = vmov 0.0  }
  0x5b   : > { %279 = vst.msk [vmem:[#allocation2] sm:$0xff] %vm278_vm0, %v1762_v0  ;;  %280 = vst.msk [vmem:[#allocation3] sm:$0xff] %vm278_vm0, %v1762_v0 }
  0x5c PF: > { %v1956_v1 = vld [vmem:[#allocation7 + $0x18] sm:$0xff]  ;;  %v1763_v2 = vmov 0.0   ;;  %v1959_v3 = vld [vmem:[#allocation7 + $0x10] sm:$0xff]  ;;  %vm1764_vm1 = vmmov 0   ;;  %v1966_v4 = vld [vmem:[#allocation7 + $0x8] sm:$0xff]  ;;  %vm310_vm2 = vcmask 261120  }
  0x5d   : > { %1362 = vmatprep.subr.mxu1 %v1763_v2  ;;  %1370 = vmatprep.mubr.msk.f32.mxu1 %vm1764_vm1, %v1763_v2  ;;  %v1972_v5 = vld [vmem:[#allocation7] sm:$0xff]  ;;  %v1992_v7 = vld [vmem:[%s2248_s2] ss:$0 sm:$0xff]  ;;  %s1765_s10 = smov 64   ;;  %v1998_v21 = vld [vmem:[#allocation9 + $0x38] sm:$0xff]  ;;  %s1766_s12 = smov 96  }
  0x5e   : > { %1363 = vmatpush3.msra.mxu1 %v1956_v1  ;;  %1392 = vmatprep.subr.mxu0 %v1763_v2  ;;  %v309_v11 = vld [vmem:[%s1942_s6] sm:$0xff]  ;;  %v2000_v22 = vld [vmem:[#allocation9 + $0x30] sm:$0xff]  ;;  %v2004_v23 = vld [vmem:[#allocation9 + $0x28] sm:$0xff]  ;;  %s1767_s13 = smov 32   ;;  %vm422_vm3 = vcmask 523264   ;;  %s1305_s28 = sshll.u32 %s1822_s22, 9 }
  0x5f   : > { %1364 = vmatprep.subr.mxu1 %v1763_v2  ;;  %1393 = vmatpush3.msra.mxu0 %v1956_v1  ;;  %v2008_v25 = vld [vmem:[#allocation9 + $0x20] sm:$0xff]  ;;  %v2013_v26 = vld [vmem:[#allocation9 + $0x18] sm:$0xff]  ;;  %v2017_v27 = vld [vmem:[#allocation9 + $0x10] sm:$0xff]  ;;  %s1169_s11 = sshll.u32 %s1952_s26, 4  ;;  %s2198_s8 = scalar_lea.hbm %s2251_s5, %s1305_s28  ;;  %s2200_s11 = int_to_ptr.vmem [resolvable:$true] %s1169_s11 }
  0x60   : > { %1365 = vmatpush3.msra.mxu1 %v1959_v3  ;;  %1394 = vmatprep.subr.mxu0 %v1763_v2  ;;  %v2022_v29 = vld [vmem:[#allocation9 + $0x8] sm:$0xff]  ;;  %v2029_v30 = vld [vmem:[#allocation9] sm:$0xff]  ;;  %v2077_v53 = vld [vmem:[%s2250_s4] ss:$0 sm:$0xff]  ;;  %s1156_s29 = scalar_lea.sflag [#allocation6], %s1938_s30  ;;  %p2269_p7 = scmp.ne.s32.totalorder %s2261_s23, 0 }
  0x61   : > { %1366 = vmatprep.subr.mxu1 %v1763_v2  ;;  %1395 = vmatpush3.msra.mxu0 %v1959_v3  ;;  %v1281_v45 = vld [vmem:[%s1942_s6 + $0x8] sm:$0xff]  ;;  %s1768_s22 = smov [#allocation10]  }
  0x62   : > { %1367 = vmatpush3.msra.mxu1 %v1966_v4  ;;  %v307_v6 = vld [vmem:[#allocation2] sm:$0xff]  ;;  %1396 = vmatprep.subr.mxu0 %v1763_v2  ;;  %v308_v28 = vld [vmem:[#allocation3] sm:$0xff]  ;;  %s1691_s24 = sshll.u32 %s1768_s22, 4  ;;  %s1692_s24 = int_to_ptr.vmem [resolvable:$false] %s1691_s24 }
  0x63   : > { %1368 = vmatprep.subr.mxu1 %v1763_v2  ;;  %1397 = vmatpush3.msra.mxu0 %v1966_v4  ;;  %s1693_s9 = scalar_lea.vmem %s1692_s24, 1024  ;;  %p1694_p3 = scmp.lt.s32.totalorder %s2200_s11, %s1692_s24 }
  0x64   : > { %1369 = vmatpush3.msra.mxu1 %v1972_v5  ;;  %1398 = vmatprep.subr.mxu0 %v1763_v2 }
  0x65   : > { %1371 = vmatmul.mubr.msk.f32.vlgmr.msra.gmra.mxu1 %vm310_vm2, %v307_v6  ;;  %1373 = vmatprep.subr.mxu1 %v1763_v2 }
  0x66   : > { %1399 = vmatpush3.msra.mxu0 %v1972_v5  ;;  %1400 = vmatprep.mubr.msk.f32.mxu0 %vm1764_vm1, %v1763_v2 }
  0x67   : > { %1389 = vmatprep.mubr.msk.f32.mxu1 %vm1764_vm1, %v1763_v2  ;;  %1403 = vmatprep.subr.mxu0 %v1763_v2 }
  0x68   : > { %1374 = vmatpush3.msra.mxu1 %v1998_v21 }
  0x69   : > { %1375 = vmatprep.subr.mxu1 %v1763_v2 }
  0x6a   : > { %1376 = vmatpush3.msra.mxu1 %v2000_v22 }
  0x6b   : > { %1377 = vmatprep.subr.mxu1 %v1763_v2 }
  0x6c   : > { %1378 = vmatpush3.msra.mxu1 %v2004_v23 }
  0x6d   : > { %1379 = vmatprep.subr.mxu1 %v1763_v2 }
  0x6e   : > { %1380 = vmatpush3.msra.mxu1 %v2008_v25 }
  0x6f   : > { %1381 = vmatprep.subr.mxu1 %v1763_v2 }
  0x70   : > { %1382 = vmatpush3.msra.mxu1 %v2013_v26 }
  0x71   : > { %1383 = vmatprep.subr.mxu1 %v1763_v2 }
  0x72   : > { %1384 = vmatpush3.msra.mxu1 %v2017_v27 }
  0x73   : > { %1385 = vmatprep.subr.mxu1 %v1763_v2 }
  0x74   : > { %1386 = vmatpush3.msra.mxu1 %v2022_v29 }
  0x75   : > { %1387 = vmatprep.subr.mxu1 %v1763_v2 }
  0x76   : > { %1388 = vmatpush3.msra.mxu1 %v2029_v30 }
  0x77   : > { %1422 = vmatprep.subr.mxu1 %v1763_v2 }
 0x125   : > { %v380_v8 = vpop.f32.mrf.mxu1 }
 0x126   : > { %v381_v9 = vadd.f32 %v1992_v7, %v380_v8 }
 0x127   : > { %v1372_v10 = vpop.f32.mrf.mxu1 }
 0x128   : > { %392 = vrot.lane.b32.xlu0 %v381_v9, %s1765_s10  ;;  %v384_v12 = vadd.f32 %v381_v9, %v309_v11 }
 0x12a   : > { %v1278_v13 = vmul.f32 -1.442695, %v384_v12 }
 0x12c   : > { %1559 = vpow2.f32 %v1278_v13 }
 0x139   : > { %v1560_v14 = vpop.eup %1559 }
 0x13a   : > { %v388_v15 = vadd.f32 1.0, %v1560_v14 }
 0x13c   : > { %1561 = vrcp.f32 %v388_v15 }
 0x149   : > { %v1562_v16 = vpop.eup %1561 }
 0x14a   : > { %v402_v32 = vsub.f32 1.0, %v1562_v16 }
 0x19a   : > { %v393_v17 = vpop.permute.xlu0 %392 }
 0x19b   : > { %v395_v18 = vmul.f32 %v1562_v16, %v393_v17 }
 0x19d   : > { %397 = vrot.lane.b32.xlu0 %v395_v18, %s1765_s10 }
 0x20f   : > { %v398_v19 = vpop.permute.xlu0 %397 }
 0x210   : > { %v400_v20 = vadd.f32 %v398_v19, %v309_v11 }
 0x212   : > { %1563 = vtanh.f32 %v400_v20 }
 0x21f   : > { %v1564_v24 = vpop.eup %1563 }
 0x220   : > { %404 = vrot.lane.b32.xlu1 %v1564_v24, %s1766_s12 }
 0x224   : > { %408 = vrot.lane.b32.xlu1 %v307_v6, %s1767_s13 }
 0x228   : > { %418 = vrot.lane.b32.xlu1 %v308_v28, %s1767_s13 }
 0x292   : > { %v405_v31 = vpop.permute.xlu1 %404 }
 0x293   : > { %v407_v34 = vmul.f32 %v405_v31, %v402_v32  ;;  %v1287_v32 = vld [vmem:[%s1942_s6 + $0x10] sm:$0xff] }
 0x296   : > { %v409_v33 = vpop.permute.xlu1 %408 }
 0x297   : > { %v411_v35 = vmul.f32 %v1562_v16, %v409_v33 }
 0x299   : > { %v2033_v36 = vadd.f32 %v411_v35, %v407_v34 }
 0x29a   : > { %v2037_v37 = vpop.permute.xlu1 %418 }
 0x29b   : > { %414 = vrot.lane.b32.xlu0 %v2033_v36, %s1766_s12 }
 0x30d   : > { %v415_v38 = vpop.permute.xlu0 %414 }
 0x30e   : > { %v421_v39 = vsel %vm310_vm2, %v415_v38, %v2037_v37  ;;  %1401 = vmatmul.mubr.msk.f32.vlgmr.msra.gmra.mxu0 %vm310_vm2, %v415_v38 }
 0x30f   : > { %1390 = vmatmul.mubr.msk.f32.vlgmr.msra.gmra.mxu1 %vm422_vm3, %v421_v39  ;;  %1404 = vmatpush3.msra.mxu0 %v1998_v21 }
 0x310   : > { %1423 = vmatpush3.msra.mxu1 %v1956_v1  ;;  %1405 = vmatprep.subr.mxu0 %v1763_v2 }
 0x311   : > { %1424 = vmatprep.subr.mxu1 %v1763_v2  ;;  %1406 = vmatpush3.msra.mxu0 %v2000_v22 }
 0x312   : > { %1425 = vmatpush3.msra.mxu1 %v1959_v3  ;;  %1407 = vmatprep.subr.mxu0 %v1763_v2 }
 0x313   : > { %1426 = vmatprep.subr.mxu1 %v1763_v2  ;;  %1408 = vmatpush3.msra.mxu0 %v2004_v23 }
 0x314   : > { %1427 = vmatpush3.msra.mxu1 %v1966_v4  ;;  %1409 = vmatprep.subr.mxu0 %v1763_v2 }
 0x315   : > { %1428 = vmatprep.subr.mxu1 %v1763_v2  ;;  %1430 = vmatprep.mubr.msk.f32.mxu1 %vm1764_vm1, %v1763_v2 }
 0x316   : > { %1429 = vmatpush3.msra.mxu1 %v1972_v5  ;;  %1410 = vmatpush3.msra.mxu0 %v2008_v25 }
 0x317   : > { %1411 = vmatprep.subr.mxu0 %v1763_v2  ;;  %1419 = vmatprep.mubr.msk.f32.mxu0 %vm1764_vm1, %v1763_v2 }
 0x318   : > { %1412 = vmatpush3.msra.mxu0 %v2013_v26  ;;  %1433 = vmatprep.subr.mxu1 %v1763_v2 }
 0x319   : > { %1413 = vmatprep.subr.mxu0 %v1763_v2 }
 0x31a   : > { %1414 = vmatpush3.msra.mxu0 %v2017_v27 }
 0x31b   : > { %1415 = vmatprep.subr.mxu0 %v1763_v2 }
 0x31c   : > { %1416 = vmatpush3.msra.mxu0 %v2022_v29 }
 0x31d   : > { %1417 = vmatprep.subr.mxu0 %v1763_v2 }
 0x31e   : > { %1418 = vmatpush3.msra.mxu0 %v2029_v30 }
 0x31f   : > { %1452 = vmatprep.subr.mxu0 %v1763_v2 }
 0x3ce   : > { %v596_v40 = vpop.f32.mrf.mxu0 }
 0x3cf   : > { %v597_v41 = vadd.f32 %v1992_v7, %v596_v40  ;;  %v492_v42 = vpop.f32.mrf.mxu1 }
 0x3d0   : > { %v1402_v43 = vpop.f32.mrf.mxu0  ;;  %v493_v54 = vadd.f32 %v2077_v53, %v492_v42 }
 0x3d1   : > { %608 = vrot.lane.b32.xlu0 %v597_v41, %s1765_s10  ;;  %v1391_v44 = vpop.f32.mrf.mxu1  ;;  %v600_v46 = vadd.f32 %v1281_v45, %v597_v41 }
 0x3d2   : > { %v1280_v55 = vmul.f32 -1.442695, %v493_v54 }
 0x3d3   : > { %v1283_v47 = vmul.f32 -1.442695, %v600_v46 }
 0x3d5   : > { %1565 = vpow2.f32 %v1283_v47 }
 0x3e2   : > { %v1566_v48 = vpop.eup %1565 }
 0x3e3   : > { %v604_v49 = vadd.f32 1.0, %v1566_v48 }
 0x3e5   : > { %1567 = vrcp.f32 %v604_v49 }
 0x3e6   : > { %1569 = vpow2.f32 %v1280_v55 }
 0x3f2   : > { %v1568_v50 = vpop.eup %1567 }
 0x3f3   : > { %v1570_v56 = vpop.eup %1569  ;;  %v618_v8 = vsub.f32 1.0, %v1568_v50  ;;  %v624_v10 = vmul.f32 %v1568_v50, %v2033_v36 }
 0x3f4   : > { %v499_v57 = vadd.f32 1.0, %v1570_v56 }
 0x3f6   : > { %1571 = vrcp.f32 %v499_v57 }
 0x403   : > { %v1572_v60 = vpop.eup %1571 }
 0x404   : > { %v513_v15 = vsub.f32 1.0, %v1572_v60  ;;  %v519_v17 = vmul.f32 %v1572_v60, %v2037_v37 }
 0x443   : > { %v609_v51 = vpop.permute.xlu0 %608 }
 0x444   : > { %v611_v52 = vmul.f32 %v1568_v50, %v609_v51 }
 0x446   : > { %613 = vrot.lane.b32.xlu1 %v611_v52, %s1765_s10 }
 0x44a   : > { %503 = vrot.lane.b32.xlu1 %v493_v54, %s1767_s13 }
 0x4b8   : > { %v614_v58 = vpop.permute.xlu1 %613 }
 0x4b9   : > { %v616_v59 = vadd.f32 %v1281_v45, %v614_v58 }
 0x4bb   : > { %1573 = vtanh.f32 %v616_v59 }
 0x4bc   : > { %v504_v61 = vpop.permute.xlu1 %503 }
 0x4bd   : > { %v506_v62 = vmul.f32 %v1572_v60, %v504_v61 }
 0x4bf   : > { %508 = vrot.lane.b32.xlu1 %v506_v62, %s1765_s10 }
 0x4c8   : > { %v1574_v63 = vpop.eup %1573 }
 0x4c9   : > { %620 = vrot.lane.b32.xlu0 %v1574_v63, %s1766_s12 }
 0x531   : > { %v509_v0 = vpop.permute.xlu1 %508 }
 0x532   : > { %v511_v6 = vadd.f32 %v509_v0, %v493_v54 }
 0x534   : > { %1575 = vtanh.f32 %v511_v6 }
 0x53b   : > { %v621_v9 = vpop.permute.xlu0 %620 }
 0x53c   : > { %v623_v11 = vmul.f32 %v621_v9, %v618_v8 }
 0x53e   : > { %v2085_v12 = vadd.f32 %v624_v10, %v623_v11 }
 0x540   : > { %627 = vrot.lane.b32.xlu0 %v2085_v12, %s1766_s12 }
 0x541   : > { %v1576_v13 = vpop.eup %1575 }
 0x544   : > { %515 = vrot.lane.b32.xlu0 %v1576_v13, %s1766_s12 }
 0x5b2   : > { %v628_v14 = vpop.permute.xlu0 %627 }
 0x5b3   : > { %1431 = vmatmul.mubr.msk.f32.vlgmr.msra.gmra.mxu1 %vm310_vm2, %v628_v14 }
 0x5b4   : > { %1434 = vmatpush3.msra.mxu1 %v1998_v21  ;;  %1449 = vmatprep.mubr.msk.f32.mxu1 %vm1764_vm1, %v1763_v2 }
 0x5b5   : > { %1435 = vmatprep.subr.mxu1 %v1763_v2 }
 0x5b6   : > { %v516_v16 = vpop.permute.xlu0 %515  ;;  %1436 = vmatpush3.msra.mxu1 %v2000_v22 }
 0x5b7   : > { %v518_v18 = vmul.f32 %v516_v16, %v513_v15  ;;  %1437 = vmatprep.subr.mxu1 %v1763_v2 }
 0x5b8   : > { %1438 = vmatpush3.msra.mxu1 %v2004_v23 }
 0x5b9   : > { %v2099_v19 = vadd.f32 %v519_v17, %v518_v18  ;;  %1439 = vmatprep.subr.mxu1 %v1763_v2 }
 0x5ba   : > { %1440 = vmatpush3.msra.mxu1 %v2008_v25 }
 0x5bb   : > { %v630_v20 = vsel %vm310_vm2, %v628_v14, %v2099_v19  ;;  %1441 = vmatprep.subr.mxu1 %v1763_v2 }
 0x5bc   : > { %1420 = vmatmul.mubr.msk.f32.vlgmr.msra.gmra.mxu0 %vm422_vm3, %v630_v20  ;;  %1442 = vmatpush3.msra.mxu1 %v2013_v26 }
 0x5bd   : > { %1453 = vmatpush3.msra.mxu0 %v1956_v1  ;;  %1443 = vmatprep.subr.mxu1 %v1763_v2 }
 0x5be   : > { %1454 = vmatprep.subr.mxu0 %v1763_v2  ;;  %1444 = vmatpush3.msra.mxu1 %v2017_v27 }
 0x5bf   : > { %1455 = vmatpush3.msra.mxu0 %v1959_v3  ;;  %1445 = vmatprep.subr.mxu1 %v1763_v2 }
 0x5c0   : > { %1456 = vmatprep.subr.mxu0 %v1763_v2  ;;  %1446 = vmatpush3.msra.mxu1 %v2022_v29 }
 0x5c1   : > { %1457 = vmatpush3.msra.mxu0 %v1966_v4  ;;  %1447 = vmatprep.subr.mxu1 %v1763_v2 }
 0x5c2   : > { %1458 = vmatprep.subr.mxu0 %v1763_v2  ;;  %1460 = vmatprep.mubr.msk.f32.mxu0 %vm1764_vm1, %v1763_v2 }
 0x5c3   : > { %1459 = vmatpush3.msra.mxu0 %v1972_v5  ;;  %1448 = vmatpush3.msra.mxu1 %v2029_v30 }
 0x5c4   : > { %1463 = vmatprep.subr.mxu0 %v1763_v2 }
 0x673   : > { %v805_v1 = vpop.f32.mrf.mxu1 }
 0x674   : > { %v806_v3 = vadd.f32 %v1992_v7, %v805_v1 }
 0x675   : > { %v1432_v24 = vpop.f32.mrf.mxu1 }
 0x676   : > { %817 = vrot.lane.b32.xlu1 %v806_v3, %s1765_s10  ;;  %v809_v33 = vadd.f32 %v1287_v32, %v806_v3 }
 0x678   : > { %v1289_v34 = vmul.f32 -1.442695, %v809_v33 }
 0x67a   : > { %1577 = vpow2.f32 %v1289_v34 }
 0x67c   : > { %v700_v4 = vpop.f32.mrf.mxu0 }
 0x67d   : > { %v701_v28 = vadd.f32 %v2077_v53, %v700_v4 }
 0x67e   : > { %v1421_v31 = vpop.f32.mrf.mxu0 }
 0x67f   : > { %711 = vrot.lane.b32.xlu1 %v701_v28, %s1767_s13  ;;  %v1285_v5 = vmul.f32 -1.442695, %v701_v28 }
 0x681   : > { %1579 = vpow2.f32 %v1285_v5 }
 0x687   : > { %v1578_v35 = vpop.eup %1577 }
 0x688   : > { %v813_v36 = vadd.f32 1.0, %v1578_v35 }
 0x68a   : > { %1581 = vrcp.f32 %v813_v36 }
 0x68e   : > { %v1580_v37 = vpop.eup %1579 }
 0x68f   : > { %v707_v38 = vadd.f32 1.0, %v1580_v37 }
 0x691   : > { %1583 = vrcp.f32 %v707_v38 }
 0x697   : > { %v1582_v39 = vpop.eup %1581 }
 0x698   : > { %v827_v51 = vsub.f32 1.0, %v1582_v39  ;;  %v833_v54 = vmul.f32 %v1582_v39, %v2085_v12 }
 0x69e   : > { %v1584_v42 = vpop.eup %1583 }
 0x69f   : > { %v721_v58 = vsub.f32 1.0, %v1584_v42  ;;  %v727_v60 = vmul.f32 %v1584_v42, %v2099_v19 }
 0x6e8   : > { %v818_v40 = vpop.permute.xlu1 %817 }
 0x6e9   : > { %v820_v41 = vmul.f32 %v1582_v39, %v818_v40 }
 0x6eb   : > { %822 = vrot.lane.b32.xlu0 %v820_v41, %s1765_s10 }
 0x6f1   : > { %v712_v43 = vpop.permute.xlu1 %711 }
 0x6f2   : > { %v714_v44 = vmul.f32 %v1584_v42, %v712_v43 }
 0x6f4   : > { %716 = vrot.lane.b32.xlu1 %v714_v44, %s1765_s10 }
 0x75d   : > { %v823_v45 = vpop.permute.xlu0 %822 }
 0x75e   : > { %v825_v46 = vadd.f32 %v1287_v32, %v823_v45 }
 0x760   : > { %1585 = vtanh.f32 %v825_v46 }
 0x766   : > { %v717_v47 = vpop.permute.xlu1 %716 }
 0x767   : > { %v719_v48 = vadd.f32 %v717_v47, %v701_v28 }
 0x769   : > { %1587 = vtanh.f32 %v719_v48 }
 0x76d   : > { %v1586_v49 = vpop.eup %1585 }
 0x76e   : > { %829 = vrot.lane.b32.xlu0 %v1586_v49, %s1766_s12 }
 0x776   : > { %v1588_v50 = vpop.eup %1587 }
 0x777   : > { %723 = vrot.lane.b32.xlu1 %v1588_v50, %s1766_s12 }
 0x7e0   : > { %v830_v52 = vpop.permute.xlu0 %829 }
 0x7e1   : > { %v832_v55 = vmul.f32 %v830_v52, %v827_v51 }
 0x7e3   : > { %v2134_v56 = vadd.f32 %v833_v54, %v832_v55 }
 0x7e5   : > { %836 = vrot.lane.b32.xlu0 %v2134_v56, %s1766_s12 }
 0x7e9   : > { %v724_v57 = vpop.permute.xlu1 %723 }
 0x7ea   : > { %v726_v59 = vmul.f32 %v724_v57, %v721_v58 }
 0x7ec   : > { %v2139_v61 = vadd.f32 %v727_v60, %v726_v59 }
 0x857   : > { %v837_v62 = vpop.permute.xlu0 %836 }
 0x858   : > { %v839_v63 = vsel %vm310_vm2, %v837_v62, %v2139_v61  ;;  %1461 = vmatmul.mubr.msk.f32.vlgmr.msra.gmra.mxu0 %vm310_vm2, %v837_v62 }
 0x859   : > { %1450 = vmatmul.mubr.msk.f32.vlgmr.msra.gmra.mxu1 %vm422_vm3, %v839_v63  ;;  %1464 = vmatpush3.msra.mxu0 %v1998_v21 }
 0x85a   : > { %1465 = vmatprep.subr.mxu0 %v1763_v2  ;;  %1479 = vmatprep.mubr.msk.f32.mxu0 %vm1764_vm1, %v1763_v2 }
 0x85b   : > { %1466 = vmatpush3.msra.mxu0 %v2000_v22 }
 0x85c   : > { %1467 = vmatprep.subr.mxu0 %v1763_v2 }
 0x85d   : > { %1468 = vmatpush3.msra.mxu0 %v2004_v23 }
 0x85e   : > { %1469 = vmatprep.subr.mxu0 %v1763_v2 }
 0x85f   : > { %1470 = vmatpush3.msra.mxu0 %v2008_v25 }
 0x860   : > { %1471 = vmatprep.subr.mxu0 %v1763_v2 }
 0x861   : > { %1472 = vmatpush3.msra.mxu0 %v2013_v26 }
 0x862   : > { %1473 = vmatprep.subr.mxu0 %v1763_v2 }
 0x863   : > { %1474 = vmatpush3.msra.mxu0 %v2017_v27  ;;  %v1293_v27 = vld [vmem:[%s1942_s6 + $0x18] sm:$0xff]  ;;  %s1687_s6 = scalar_lea.vmem %s2200_s11, 512 }
 0x864   : > { %1475 = vmatprep.subr.mxu0 %v1763_v2  ;;  %p1688_p2 = scmp.ne.s32.totalorder %s2200_s11, %s1687_s6  ;;  %p1695_p8 = scmp.lt.s32.totalorder %s1693_s9, %s1687_s6 }
 0x865   : > { %1476 = vmatpush3.msra.mxu0 %v2022_v29 }
 0x866   : > { %1477 = vmatprep.subr.mxu0 %v1763_v2  ;;  %p1689_p13 = pnand %p1688_p2, %p2269_p7  ;;  %p1696_p5 = por %p1695_p8, %p1694_p3 }
 0x867   : > { %1478 = vmatpush3.msra.mxu0 %v2029_v30 }
 0x868   : > { %p1690_p0 = pneg %p1689_p13 }
 0x86a   : > { %p1697_p12 = pnand %p1696_p5, %p1690_p0 }
 0x918   : > { %v1014_v21 = vpop.f32.mrf.mxu0 }
 0x919   : > { %v1015_v22 = vadd.f32 %v1992_v7, %v1014_v21  ;;  %v909_v23 = vpop.f32.mrf.mxu1 }
 0x91a   : > { %v910_v25 = vadd.f32 %v2077_v53, %v909_v23  ;;  %v1462_v0 = vpop.f32.mrf.mxu0 }
 0x91b   : > { %1026 = vrot.lane.b32.xlu0 %v1015_v22, %s1765_s10  ;;  %v1451_v26 = vpop.f32.mrf.mxu1  ;;  %v1018_v6 = vadd.f32 %v1293_v27, %v1015_v22 }
 0x91c   : > { %920 = vrot.lane.b32.xlu1 %v910_v25, %s1767_s13  ;;  %v1291_v29 = vmul.f32 -1.442695, %v910_v25 }
 0x91d   : > { %v1295_v8 = vmul.f32 -1.442695, %v1018_v6 }
 0x91f   : > { %1589 = vpow2.f32 %v1295_v8 }
 0x920   : > { %1591 = vpow2.f32 %v1291_v29 }
 0x92c   : > { %v1590_v2 = vpop.eup %1589 }
 0x92d   : > { %v1592_v30 = vpop.eup %1591  ;;  %v1022_v9 = vadd.f32 1.0, %v1590_v2 }
 0x92e   : > { %v916_v10 = vadd.f32 1.0, %v1592_v30 }
 0x92f   : > { %1593 = vrcp.f32 %v1022_v9 }
 0x930   : > { %1595 = vrcp.f32 %v916_v10 }
 0x93c   : > { %v1594_v7 = vpop.eup %1593 }
 0x93d   : > { %v1596_v12 = vpop.eup %1595  ;;  %v1036_v24 = vsub.f32 1.0, %v1594_v7  ;;  %v1042_v28 = vmul.f32 %v1594_v7, %v2134_v56 }
 0x93e   : > { %v930_v34 = vsub.f32 1.0, %v1596_v12  ;;  %v936_v35 = vmul.f32 %v1596_v12, %v2139_v61 }
 0x98d   : > { %v1027_v11 = vpop.permute.xlu0 %1026 }
 0x98e   : > { %v1029_v13 = vmul.f32 %v1594_v7, %v1027_v11  ;;  %v921_v14 = vpop.permute.xlu1 %920 }
 0x98f   : > { %v923_v15 = vmul.f32 %v1596_v12, %v921_v14 }
 0x990   : > { %1031 = vrot.lane.b32.xlu0 %v1029_v13, %s1765_s10 }
 0x991   : > { %925 = vrot.lane.b32.xlu1 %v923_v15, %s1765_s10 }
 0xa02   : > { %v1032_v16 = vpop.permute.xlu0 %1031 }
 0xa03   : > { %v1034_v17 = vadd.f32 %v1293_v27, %v1032_v16  ;;  %v926_v18 = vpop.permute.xlu1 %925 }
 0xa04   : > { %v928_v20 = vadd.f32 %v926_v18, %v910_v25 }
 0xa05   : > { %1597 = vtanh.f32 %v1034_v17 }
 0xa06   : > { %1599 = vtanh.f32 %v928_v20 }
 0xa12   : > { %v1598_v1 = vpop.eup %1597 }
 0xa13   : > { %v1600_v3 = vpop.eup %1599  ;;  %1038 = vrot.lane.b32.xlu0 %v1598_v1, %s1766_s12 }
 0xa14   : > { %932 = vrot.lane.b32.xlu1 %v1600_v3, %s1766_s12 }
 0xa85   : > { %v1039_v4 = vpop.permute.xlu0 %1038 }
 0xa86   : > { %v1041_v31 = vmul.f32 %v1039_v4, %v1036_v24  ;;  %v933_v33 = vpop.permute.xlu1 %932 }
 0xa87   : > { %v935_v5 = vmul.f32 %v933_v33, %v930_v34 }
 0xa88   : > { %v1043_v32 = vadd.f32 %v1042_v28, %v1041_v31 }
 0xa89   : > { %v937_v36 = vadd.f32 %v936_v35, %v935_v5 }
 0xa8a   : > { %1045 = vrot.lane.b32.xlu0 %v1043_v32, %s1766_s12 }
 0xafc   : > { %v1046_v37 = vpop.permute.xlu0 %1045 }
 0xafd   : > { %v1048_v38 = vsel %vm310_vm2, %v1046_v37, %v937_v36  ;;  %1153 = vst.msk [vmem:[#allocation2] sm:$0xff] %vm310_vm2, %v1046_v37 }
 0xafe   : > { %1480 = vmatmul.mubr.msk.f32.vlgmr.msra.gmra.mxu0 %vm422_vm3, %v1048_v38 }
 0xbbe   : > { %v1118_v39 = vpop.f32.mrf.mxu0 }
 0xbbf   : > { %v1119_v40 = vadd.f32 %v2077_v53, %v1118_v39 }
 0xbc0   : > { %v1481_v41 = vpop.f32.mrf.mxu0 }
 0xbc1   : > { %1129 = vrot.lane.b32.xlu1 %v1119_v40, %s1767_s13  ;;  %v1297_v42 = vmul.f32 -1.442695, %v1119_v40 }
 0xbc3   : > { %1601 = vpow2.f32 %v1297_v42 }
 0xbd0   : > { %v1602_v43 = vpop.eup %1601 }
 0xbd1   : > { %v1125_v44 = vadd.f32 1.0, %v1602_v43 }
 0xbd3   : > { %1603 = vrcp.f32 %v1125_v44 }
 0xbe0   : > { %v1604_v45 = vpop.eup %1603 }
 0xbe1   : > { %v1145_v54 = vmul.f32 %v1604_v45, %v937_v36 }
 0xc33   : > { %v1130_v46 = vpop.permute.xlu1 %1129 }
 0xc34   : > { %v1132_v47 = vmul.f32 %v1604_v45, %v1130_v46 }
 0xc36   : > { %1134 = vrot.lane.b32.xlu0 %v1132_v47, %s1765_s10 }
 0xc3a   : > { %522 = vrot.lane.b32.xlu0 %v2099_v19, %s1766_s12  ;;  %v1139_v19 = vsub.f32 1.0, %v1604_v45 }
 0xc3e   : > { %939 = vrot.lane.b32.xlu0 %v937_v36, %s1766_s12 }
 0xca8   : > { %v1135_v53 = vpop.permute.xlu0 %1134 }
 0xca9   : > { %v1137_v48 = vadd.f32 %v1135_v53, %v1119_v40 }
 0xcab   : > { %1605 = vtanh.f32 %v1137_v48 }
 0xcac   : > { %v523_v49 = vpop.permute.xlu0 %522 }
 0xcad   : > { %525 = vst.msk [vmem:[%s1952_s26] sm:$0xff] %vm310_vm2, %v523_v49 }
 0xcb0   : > { %v940_v50 = vpop.permute.xlu0 %939 }
 0xcb1   : > { %1292 = vst.msk [vmem:[%s1952_s26 + $0x10] sm:$0xff] %vm310_vm2, %v940_v50 }
 0xcb8   : > { %v1606_v51 = vpop.eup %1605 }
 0xcb9   : > { %1141 = vrot.lane.b32.xlu1 %v1606_v51, %s1766_s12 }
 0xcbd   : > { %730 = vrot.lane.b32.xlu1 %v2139_v61, %s1766_s12 }
 0xd2b   : > { %v1142_v52 = vpop.permute.xlu1 %1141 }
 0xd2c   : > { %v1144_v55 = vmul.f32 %v1142_v52, %v1139_v19 }
 0xd2e   : > { %v1146_v56 = vadd.f32 %v1145_v54, %v1144_v55 }
 0xd2f   : > { %v731_v57 = vpop.permute.xlu1 %730 }
 0xd30   : > { %1286 = vst.msk [vmem:[%s1952_s26 + $0x8] sm:$0xff] %vm310_vm2, %v731_v57  ;;  %1148 = vrot.lane.b32.xlu1 %v1146_v56, %s1766_s12 }
 0xda2   : > { %v1149_v58 = vpop.permute.xlu1 %1148 }
 0xda3   : > { %1298 = vst.msk [vmem:[%s1952_s26 + $0x18] sm:$0xff] %vm310_vm2, %v1149_v58  ;;  %1154 = vst.msk [vmem:[#allocation3] sm:$0xff] %vm310_vm2, %v1149_v58 }
 0xda4   : > { %1700 = shalt.err (!%p1697_p12)
}
 0xda5   : > { %s1701_s26 = scalar_lea.hbm %s2198_s8, 512  ;;  %s1705_s13 = scalar_lea.hbm %s2251_s5, 1024 }
 0xda6   : > { %p1702_p10 = scmp.ne.s32.totalorder %s2198_s8, %s1701_s26  ;;  %p1706_p6 = scmp.lt.s32.totalorder %s2198_s8, %s2251_s5 }
 0xda7   : > { %p1707_p9 = scmp.lt.s32.totalorder %s1705_s13, %s1701_s26 }
 0xda8   : > { %p1703_p1 = pnand %p1702_p10, %p2269_p7 }
 0xda9   : > { %p1708_p11 = por %p1707_p9, %p1706_p6 }
 0xdaa   : > { %p1704_p4 = pneg %p1703_p1 }
 0xdac   : > { %p1709_p2 = pnand %p1708_p11, %p1704_p4 }
 0xdae   : > { %1712 = shalt.err (!%p1709_p2)
}
 0xdaf   : > { %s1769_s28 = smov 128   ;;  %s1770_s17 = smov 8  }
 0xdb0   : > { %1492 = dma.vmem_to_hbm [thread:$0]  (%p2269_p7), %s2200_s11, 512, %s2198_s8, %s1156_s29, %s1769_s28, %s1769_s28, %s1770_s17  }
 0xdb1 PF: > { %s1184_s16 = sand.u32 1, %s1743_s18   ;;  %p2270_p13 = scmp.ne.s32.totalorder %s2258_s25, 0 }
 0xdb2   : > { %p2271_p0 = scmp.ge.s32.totalorder %s1755_s21, 2  ;;  %s1185_s6 = scalar_lea.sflag [#allocation6], %s1184_s16 }
 0xdb4   : > { %p1506_p3 = pnand %p2271_p0, %p2270_p13 }
 0xdb6   : > { %p1507_p8 = pneg %p1506_p3 }
 0xdb8   : > { %1738 = dma.done.wait (%p1507_p8), %s1185_s6, 512  }
 0xdb9   : > { %1740 = vsyncadd (%p1507_p8), %s1185_s6, 4294966784  ;;  %p19_p5 = scmp.ge.s32.totalorder %s1880_s15, 4   ;;  %s2272_s18 = smov %s1747_s19 }
 0xdba   : > { %s2273_s19 = smov %s1751_s20  ;;  %s2274_s20 = smov %s1896_s27 }
 0xdbb   : > { %s2275_s21 = smov %s1880_s15  ;;  %21 = sbr.rel (!%p19_p5) target bundleno = 6 (0x6), region = 103 }
 0xdc0   :  { %1190 = vsyncpa [#allocation5], 1 }
 0xdc1   :  { %1192 = vsyncpa [#allocation5 + $0x1], 1 }
 0xdc2   :  { %1193 = vsyncpa [#allocation8], 1 }
 0xdc3   :  { %1194 = vsyncpa [#allocation6], 1 }
 0xdc4   :  { %1196 = vsyncpa [#allocation6 + $0x1], 1 }

</bundles_post_ra>
